<compile_context>
chip_gen: v5e
topology: v5e:2x2
jax: 0.10.0
libtpu: 0.0.40
codegen_flags: <defaults>
</compile_context>

<pallas_src>
from functools import partial

import jax
import jax.numpy as jnp
from jax.experimental import pallas as pl
from jax.experimental.pallas import tpu as pltpu


# --------------------------------------------------------------------------
# Kernel body
# --------------------------------------------------------------------------
def _projector_kernel(hi_ref, hj_ref, w1t_ref, w2t_ref, zi_ref, zj_ref):
    """One batch tile of both views.

    hi_ref, hj_ref : (TB, F)  activations (compute dtype, e.g. bf16)
    w1t_ref        : (F, F)   first  Linear weight, already (in, out) layout
    w2t_ref        : (F, P)   second Linear weight, already (in, out) layout
    zi_ref, zj_ref : (TB, P)  outputs
    """
    w1t = w1t_ref[...]
    w2t = w2t_ref[...]

    def proj(h):
        # Plain (M,K)x(K,N) contractions -> straight MXU, f32 accumulation.
        hidden = jnp.dot(h, w1t, preferred_element_type=jnp.float32)
        hidden = jnp.maximum(hidden, 0.0).astype(h.dtype)  # ReLU in f32, cast
        return jnp.dot(hidden, w2t, preferred_element_type=jnp.float32)

    zi_ref[...] = proj(hi_ref[...]).astype(zi_ref.dtype)
    zj_ref[...] = proj(hj_ref[...]).astype(zj_ref.dtype)


# --------------------------------------------------------------------------
# Host-side sizing helpers (generation aware)
# --------------------------------------------------------------------------
_MIN_DEFAULT_SCOPED_VMEM = 16 * 1024 * 1024   # v5e default scoped VMEM (min)


def _vmem_capacity_bytes():
    """Physical per-core VMEM; falls back to the smallest (v7x: 64 MiB)."""
    try:
        return int(pltpu.get_tpu_info().vmem_capacity_bytes)
    except Exception:
        return 64 * 1024 * 1024


def _vmem_footprint(tb, F, P, itemsize):
    """Estimated VMEM bytes for one grid step."""
    weights = (F * F + F * P) * itemsize      # single-buffered (Buffered(1))
    acts = 2 * 2 * tb * F * itemsize          # h_i + h_j, double-buffered
    outs = 2 * 2 * tb * P * itemsize          # z_i + z_j, double-buffered
    hidden = 2 * tb * F * 4                   # f32 intermediates (headroom)
    return weights + acts + outs + hidden


def _pick_batch_tile(B, F, P, itemsize, budget_bytes):
    """Largest 8-aligned batch tile whose footprint fits the VMEM budget.

    round_up(B, 8) itself is a candidate; the final grid block may be partial
    (Pallas masks the writeback).  No "even division" preference.
    """
    if B <= 8:
        return B

    weights = (F * F + F * P) * itemsize
    if weights >= budget_bytes:
        # TODO(synk): add a K-tiled grid axis (f32 accumulator scratch with
        # pl.when init/finalize) for feature dims whose weights exceed VMEM.
        raise ValueError(
            f"SimCLR projector weights ({weights / 2**20:.1f} MiB) exceed the "
            f"VMEM budget ({budget_bytes / 2**20:.1f} MiB); K-tiling is not "
            "implemented.")

    b8 = ((B + 7) // 8) * 8
    candidates = sorted({b8, 1024, 512, 256, 128, 64, 32, 16, 8})
    candidates = [t for t in candidates if t <= b8]
    fitting = [t for t in candidates
               if _vmem_footprint(t, F, P, itemsize) <= budget_bytes]
    if not fitting:
        raise ValueError(
            "Even the smallest batch tile does not fit the VMEM budget "
            f"(F={F}, P={P}, budget={budget_bytes / 2**20:.1f} MiB).")
    return max(fitting)


def _maybe_split_for_megacore(tb, B, F):
    """If the whole batch fits one tile but the problem is compute-bound
    (large feature dim), split into >= 2 grid steps so the 'parallel' batch
    axis can feed both v7x TensorCores.  Irrelevant (skipped) for small F."""
    if tb >= B and F >= 1024 and B >= 16:
        half = (B + 1) // 2
        return ((half + 7) // 8) * 8
    return tb


def _weight_block_spec(shape):
    """Constant-index, VMEM-resident weight spec; single-buffered when the
    installed Pallas version supports pipeline_mode."""
    try:
        return pl.BlockSpec(shape, lambda i: (0, 0),
                            pipeline_mode=pl.Buffered(1))
    except TypeError:
        return pl.BlockSpec(shape, lambda i: (0, 0))


# --------------------------------------------------------------------------
# Public entry point
# --------------------------------------------------------------------------
@partial(jax.jit, static_argnames=("compute_dtype",))
def simclr_forward(h_i, h_j, w1, w2, *, compute_dtype=jnp.bfloat16):
    """SimCLR forward: (z_i, z_j) = (projector(h_i), projector(h_j)).

    h_i, h_j : (B, F)  encoder features for the two augmented views
    w1       : (F, F)  PyTorch Linear weight layout (out, in)
    w2       : (P, F)  PyTorch Linear weight layout (out, in)

    Matmuls run in `compute_dtype` (bf16 by default: 2x MXU throughput on
    v6e/v7x, half the HBM/VMEM traffic) with f32 accumulation and f32 ReLU;
    outputs are returned in the input dtype.
    """
    B, F = h_i.shape
    P = w2.shape[0]
    out_dtype = h_i.dtype
    cd = jnp.dtype(compute_dtype)
    itemsize = cd.itemsize

    # One-time (per call) layout fix-up outside the kernel: cast to the
    # compute dtype and transpose the (out, in) PyTorch weights to (in, out)
    # so the in-kernel contraction is a plain MXU matmul.
    hi = h_i.astype(cd)
    hj = h_j.astype(cd)
    w1t = jnp.asarray(w1, cd).T            # (F, F)
    w2t = jnp.asarray(w2, cd).T            # (F, P)

    # Generation-aware VMEM sizing.
    cap = _vmem_capacity_bytes()
    budget = int(cap * 0.65)
    tb = _pick_batch_tile(B, F, P, itemsize, budget)
    tb = _maybe_split_for_megacore(tb, B, F)
    grid = (pl.cdiv(B, tb),)

    est = _vmem_footprint(tb, F, P, itemsize)
    vmem_limit = None
    if est > _MIN_DEFAULT_SCOPED_VMEM:
        # Raise the scoped-VMEM limit whenever we might exceed the smallest
        # per-generation default (v5e: 16 MiB); cap well below physical VMEM
        # so the compiler keeps scratch headroom (v7x: <= ~54 MiB of 64 MiB).
        vmem_limit = min(int(est * 1.3), int(cap * 0.85))

    # Advisory cost hint so XLA schedules surrounding ops sensibly.
    flops = 2 * (2 * B) * F * F + 2 * (2 * B) * F * P
    bytes_accessed = (itemsize * (2 * B * F + F * F + F * P)
                      + jnp.dtype(out_dtype).itemsize * 2 * B * P)
    cost = pl.CostEstimate(flops=flops, transcendentals=0,
                           bytes_accessed=bytes_accessed)

    out_shape = (jax.ShapeDtypeStruct((B, P), out_dtype),
                 jax.ShapeDtypeStruct((B, P), out_dtype))

    z_i, z_j = pl.pallas_call(
        _projector_kernel,
        out_shape=out_shape,
        grid_spec=pltpu.PrefetchScalarGridSpec(
            num_scalar_prefetch=0,
            grid=grid,
            in_specs=[
                pl.BlockSpec((tb, F), lambda i: (i, 0)),   # h_i tile (pipelined)
                pl.BlockSpec((tb, F), lambda i: (i, 0)),   # h_j tile (pipelined)
                _weight_block_spec((F, F)),                # w1^T, VMEM-resident
                _weight_block_spec((F, P)),                # w2^T, VMEM-resident
            ],
            out_specs=[
                pl.BlockSpec((tb, P), lambda i: (i, 0)),
                pl.BlockSpec((tb, P), lambda i: (i, 0)),
            ],
        ),
        compiler_params=pltpu.CompilerParams(
            dimension_semantics=("parallel",),
            vmem_limit_bytes=vmem_limit,
        ),
        cost_estimate=cost,
    )(hi, hj, w1t, w2t)
    return z_i, z_j


# --------------------------------------------------------------------------
# Demo / self-test
# --------------------------------------------------------------------------
if __name__ == "__main__":
    # Small shapes consistent with the module; P=128 is the standard SimCLR
    # projection_dim.  batch=96 -> tb = round_up(96, 8) = 96 (single step,
    # full-M MXU tile; the old heuristic would have split this into 3 steps).
    batch = 96
    n_features = 256
    projection_dim = 128

    key = jax.random.PRNGKey(0)
    k_hi, k_hj, k_w1, k_w2 = jax.random.split(key, 4)

    h_i = jax.random.normal(k_hi, (batch, n_features), dtype=jnp.float32)
    h_j = jax.random.normal(k_hj, (batch, n_features), dtype=jnp.float32)

    # Deterministic synthetic weights (PyTorch Linear weight layout: (out, in)).
    bound = 1.0 / (n_features ** 0.5)
    w1 = jax.random.uniform(k_w1, (n_features, n_features), dtype=jnp.float32,
                            minval=-bound, maxval=bound)
    w2 = jax.random.uniform(k_w2, (projection_dim, n_features),
                            dtype=jnp.float32, minval=-bound, maxval=bound)

    z_i, z_j = simclr_forward(h_i, h_j, w1, w2)
    jax.block_until_ready((z_i, z_j))

    # Pure-JAX reference (same math as the PyTorch module), full f32 precision.
    def ref_proj(h):
        hidden = jnp.maximum(
            jnp.dot(h, w1.T, precision=jax.lax.Precision.HIGHEST), 0.0)
        return jnp.dot(hidden, w2.T, precision=jax.lax.Precision.HIGHEST)

    z_i_ref, z_j_ref = ref_proj(h_i), ref_proj(h_j)

    assert z_i.shape == (batch, projection_dim)
    assert z_j.shape == (batch, projection_dim)
    # bf16 MXU compute with f32 accumulation -> bf16-level tolerance vs f32 ref.
    assert jnp.allclose(z_i, z_i_ref, atol=2e-2, rtol=2e-2), \
        float(jnp.max(jnp.abs(z_i - z_i_ref)))
    assert jnp.allclose(z_j, z_j_ref, atol=2e-2, rtol=2e-2), \
        float(jnp.max(jnp.abs(z_j - z_j_ref)))

    print("KERNEL_OK")
</pallas_src>

<mosaic_0001>
module attributes {stable_mosaic.version = 11 : i64} {
  func.func @_projector_kernel(%arg0: i32, %arg1: memref<96x256xbf16, #tpu.memory_space<vmem>>, %arg2: memref<96x256xbf16, #tpu.memory_space<vmem>>, %arg3: memref<256x256xbf16, #tpu.memory_space<vmem>>, %arg4: memref<256x128xbf16, #tpu.memory_space<vmem>>, %arg5: memref<96x128xf32, #tpu.memory_space<vmem>>, %arg6: memref<96x128xf32, #tpu.memory_space<vmem>>) attributes {dimension_semantics = [#tpu.dimension_semantics<parallel>], iteration_bounds = array<i64: 1>, scalar_prefetch = 0 : i64, scratch_operands = 0 : i64, tpu.core_type = #tpu.core_type<tc>, window_params = [{transform_indices = @transform_0, window_bounds = array<i64: 96, 256>}, {transform_indices = @transform_1, window_bounds = array<i64: 96, 256>}, {pipeline_mode = #tpu.pipeline_mode<synchronous>, transform_indices = @transform_2, window_bounds = array<i64: 256, 256>}, {pipeline_mode = #tpu.pipeline_mode<synchronous>, transform_indices = @transform_3, window_bounds = array<i64: 256, 128>}, {transform_indices = @transform_4, window_bounds = array<i64: 96, 128>}, {transform_indices = @transform_5, window_bounds = array<i64: 96, 128>}]} {
    %c0 = arith.constant 0 : index
    %c0_0 = arith.constant 0 : index
    %0 = vector.load %arg3[%c0, %c0_0] : memref<256x256xbf16, #tpu.memory_space<vmem>>, vector<256x256xbf16>
    %c0_1 = arith.constant 0 : index
    %c0_2 = arith.constant 0 : index
    %1 = vector.load %arg4[%c0_1, %c0_2] : memref<256x128xbf16, #tpu.memory_space<vmem>>, vector<256x128xbf16>
    %c0_3 = arith.constant 0 : index
    %c0_4 = arith.constant 0 : index
    %2 = vector.load %arg1[%c0_3, %c0_4] : memref<96x256xbf16, #tpu.memory_space<vmem>>, vector<96x256xbf16>
    %cst = arith.constant dense<0.000000e+00> : vector<96x256xf32>
    %3 = tpu.matmul %2, %0, %cst {dimension_numbers = #tpu.dot_dimension_numbers<[1], [0], [0], [1], [0, 0, 1, 1], [], []>} : vector<96x256xbf16>, vector<256x256xbf16>, vector<96x256xf32> -> vector<96x256xf32>
    %cst_5 = arith.constant 0.000000e+00 : f32
    %4 = vector.broadcast %cst_5 : f32 to vector<96x256xf32>
    %5 = arith.maximumf %3, %4 : vector<96x256xf32>
    %6 = arith.truncf %5 : vector<96x256xf32> to vector<96x256xbf16>
    %cst_6 = arith.constant dense<0.000000e+00> : vector<96x128xf32>
    %7 = tpu.matmul %6, %1, %cst_6 {dimension_numbers = #tpu.dot_dimension_numbers<[1], [0], [0], [1], [0, 0, 1, 1], [], []>} : vector<96x256xbf16>, vector<256x128xbf16>, vector<96x128xf32> -> vector<96x128xf32>
    %c0_7 = arith.constant 0 : index
    %c0_8 = arith.constant 0 : index
    %8 = vector.load %arg5[%c0_7, %c0_8] : memref<96x128xf32, #tpu.memory_space<vmem>>, vector<96x128xf32>
    tpu.vector_store %arg5[%c0_7, %c0_8], %7 {strides = array<i32>} : memref<96x128xf32, #tpu.memory_space<vmem>>, vector<96x128xf32>,
    %c0_9 = arith.constant 0 : index
    %c0_10 = arith.constant 0 : index
    %9 = vector.load %arg2[%c0_9, %c0_10] : memref<96x256xbf16, #tpu.memory_space<vmem>>, vector<96x256xbf16>
    %cst_11 = arith.constant dense<0.000000e+00> : vector<96x256xf32>
    %10 = tpu.matmul %9, %0, %cst_11 {dimension_numbers = #tpu.dot_dimension_numbers<[1], [0], [0], [1], [0, 0, 1, 1], [], []>} : vector<96x256xbf16>, vector<256x256xbf16>, vector<96x256xf32> -> vector<96x256xf32>
    %cst_12 = arith.constant 0.000000e+00 : f32
    %11 = vector.broadcast %cst_12 : f32 to vector<96x256xf32>
    %12 = arith.maximumf %10, %11 : vector<96x256xf32>
    %13 = arith.truncf %12 : vector<96x256xf32> to vector<96x256xbf16>
    %cst_13 = arith.constant dense<0.000000e+00> : vector<96x128xf32>
    %14 = tpu.matmul %13, %1, %cst_13 {dimension_numbers = #tpu.dot_dimension_numbers<[1], [0], [0], [1], [0, 0, 1, 1], [], []>} : vector<96x256xbf16>, vector<256x128xbf16>, vector<96x128xf32> -> vector<96x128xf32>
    %c0_14 = arith.constant 0 : index
    %c0_15 = arith.constant 0 : index
    %15 = vector.load %arg6[%c0_14, %c0_15] : memref<96x128xf32, #tpu.memory_space<vmem>>, vector<96x128xf32>
    tpu.vector_store %arg6[%c0_14, %c0_15], %14 {strides = array<i32>} : memref<96x128xf32, #tpu.memory_space<vmem>>, vector<96x128xf32>,
    return
  }
  func.func @transform_0(%arg0: i32) -> (i32, i32) {
    %c0_i32 = arith.constant 0 : i32
    %c0_i32_0 = arith.constant 0 : i32
    return %arg0, %c0_i32 : i32, i32
  }
  func.func @transform_1(%arg0: i32) -> (i32, i32) {
    %c0_i32 = arith.constant 0 : i32
    %c0_i32_0 = arith.constant 0 : i32
    return %arg0, %c0_i32 : i32, i32
  }
  func.func @transform_2(%arg0: i32) -> (i32, i32) {
    %c0_i32 = arith.constant 0 : i32
    %c0_i32_0 = arith.constant 0 : i32
    %c0_i32_1 = arith.constant 0 : i32
    return %c0_i32, %c0_i32_0 : i32, i32
  }
  func.func @transform_3(%arg0: i32) -> (i32, i32) {
    %c0_i32 = arith.constant 0 : i32
    %c0_i32_0 = arith.constant 0 : i32
    %c0_i32_1 = arith.constant 0 : i32
    return %c0_i32, %c0_i32_0 : i32, i32
  }
  func.func @transform_4(%arg0: i32) -> (i32, i32) {
    %c0_i32 = arith.constant 0 : i32
    %c0_i32_0 = arith.constant 0 : i32
    return %arg0, %c0_i32 : i32, i32
  }
  func.func @transform_5(%arg0: i32) -> (i32, i32) {
    %c0_i32 = arith.constant 0 : i32
    %c0_i32_0 = arith.constant 0 : i32
    return %arg0, %c0_i32 : i32, i32
  }
}

</mosaic_0001>

<bundles_post_ra>
// kernel: simclr_forward.1
= control target key start
LH: loop header
LB: loop body
LE: loop exit
PB: predicated region body
PF: predicated region fallthrough
CT: control target
= control target key end

     0   :  { %11 = vsyncpa [#allocation3], 0  ;;  %s2059_s0 = inlined_call_operand.vmem [shape: bf16[96,256], index: 0, kind: input, shape index: {}]   ;;  %s2060_s1 = inlined_call_operand.vmem [shape: bf16[96,256], index: 1, kind: input, shape index: {}]   ;;  %s2061_s2 = inlined_call_operand.vmem [shape: bf16[256,256], index: 2, kind: input, shape index: {}]   ;;  %s2062_s3 = inlined_call_operand.vmem [shape: bf16[256,128], index: 3, kind: input, shape index: {}]   ;;  %s2063_s4 = inlined_call_operand.hbm [shape: f32[96,128], index: 4, kind: output, shape index: {0}]   ;;  %s2064_s5 = inlined_call_operand.hbm [shape: f32[96,128], index: 5, kind: output, shape index: {1}]  }
   0x1   :  { %v1191_v0 = vld [vmem:[%s2061_s2 + $0x70] sm:$0xf]  ;;  %v1388_v1 = vld [vmem:[%s2061_s2 + $0x74] sm:$0xf0]  ;;  %v1387_v5 = vld [vmem:[%s2061_s2 + $0x74] sm:$0xf] }
   0x2   :  { %v1255_v2 = vld [vmem:[%s2061_s2 + $0xf0] sm:$0xf]  ;;  %v1544_v3 = vor.u32 %v1388_v1, %v1191_v0  ;;  %v1404_v4 = vld [vmem:[%s2061_s2 + $0xf4] sm:$0xf0]  ;;  %v1193_v6 = vld [vmem:[%s2061_s2 + $0x78] sm:$0xf0] }
   0x3   :  { %v1555_v7 = vor.u32 %v1404_v4, %v1255_v2  ;;  %v1557_v8 = vor.u32 %v1387_v5, %v1193_v6  ;;  %v1403_v9 = vld [vmem:[%s2061_s2 + $0xf4] sm:$0xf]  ;;  %v1257_v10 = vld [vmem:[%s2061_s2 + $0xf8] sm:$0xf0]  ;;  %v1183_v11 = vld [vmem:[%s2061_s2 + $0x60] sm:$0xf] }
   0x4   :  { %317 = vmatpush.bf16.msra.mxu0 %v1544_v3  ;;  %v1569_v12 = vor.u32 %v1403_v9, %v1257_v10  ;;  %v1386_v13 = vld [vmem:[%s2061_s2 + $0x64] sm:$0xf0]  ;;  %v1247_v14 = vld [vmem:[%s2061_s2 + $0xe0] sm:$0xf]  ;;  %v1385_v18 = vld [vmem:[%s2061_s2 + $0x64] sm:$0xf] }
   0x5   :  { %v1402_v15 = vld [vmem:[%s2061_s2 + $0xe4] sm:$0xf0]  ;;  %356 = vmatpush.bf16.msra.mxu1 %v1555_v7  ;;  %395 = vmatpush.bf16.msra.mxu2 %v1557_v8  ;;  %v1582_v16 = vor.u32 %v1386_v13, %v1183_v11  ;;  %v1185_v19 = vld [vmem:[%s2061_s2 + $0x68] sm:$0xf0]  ;;  %v1401_v20 = vld [vmem:[%s2061_s2 + $0xe4] sm:$0xf] }
   0x6   :  { %v1584_v17 = vor.u32 %v1402_v15, %v1247_v14  ;;  %434 = vmatpush.bf16.msra.mxu3 %v1569_v12  ;;  %v1596_v21 = vor.u32 %v1385_v18, %v1185_v19  ;;  %v1249_v22 = vld [vmem:[%s2061_s2 + $0xe8] sm:$0xf0]  ;;  %v1175_v23 = vld [vmem:[%s2061_s2 + $0x50] sm:$0xf]  ;;  %v1384_v24 = vld [vmem:[%s2061_s2 + $0x54] sm:$0xf0] }
   0x7   :  { %v1607_v25 = vor.u32 %v1401_v20, %v1249_v22  ;;  %v1239_v26 = vld [vmem:[%s2061_s2 + $0xd0] sm:$0xf]  ;;  %v1400_v27 = vld [vmem:[%s2061_s2 + $0xd4] sm:$0xf0]  ;;  %v1383_v28 = vld [vmem:[%s2061_s2 + $0x54] sm:$0xf]  ;;  %v1619_v29 = vor.u32 %v1384_v24, %v1175_v23 }
   0x8   :  { %318 = vmatpush.bf16.msra.mxu0 %v1582_v16  ;;  %v1177_v30 = vld [vmem:[%s2061_s2 + $0x58] sm:$0xf0]  ;;  %v1399_v31 = vld [vmem:[%s2061_s2 + $0xd4] sm:$0xf]  ;;  %v1632_v33 = vor.u32 %v1400_v27, %v1239_v26  ;;  %v1167_v35 = vld [vmem:[%s2061_s2 + $0x40] sm:$0xf] }
   0x9   :  { %v1241_v32 = vld [vmem:[%s2061_s2 + $0xd8] sm:$0xf0]  ;;  %357 = vmatpush.bf16.msra.mxu1 %v1584_v17  ;;  %396 = vmatpush.bf16.msra.mxu2 %v1596_v21  ;;  %v1634_v34 = vor.u32 %v1383_v28, %v1177_v30  ;;  %v1382_v36 = vld [vmem:[%s2061_s2 + $0x44] sm:$0xf0]  ;;  %v1231_v37 = vld [vmem:[%s2061_s2 + $0xc0] sm:$0xf] }
   0xa   :  { %435 = vmatpush.bf16.msra.mxu3 %v1607_v25  ;;  %v1646_v38 = vor.u32 %v1399_v31, %v1241_v32  ;;  %v1398_v39 = vld [vmem:[%s2061_s2 + $0xc4] sm:$0xf0]  ;;  %v1381_v40 = vld [vmem:[%s2061_s2 + $0x44] sm:$0xf]  ;;  %v1169_v41 = vld [vmem:[%s2061_s2 + $0x48] sm:$0xf0]  ;;  %v1664_v44 = vor.u32 %v1382_v36, %v1167_v35 }
   0xb   :  { %v1397_v42 = vld [vmem:[%s2061_s2 + $0xc4] sm:$0xf]  ;;  %v1233_v43 = vld [vmem:[%s2061_s2 + $0xc8] sm:$0xf0]  ;;  %v1668_v45 = vor.u32 %v1398_v39, %v1231_v37  ;;  %v1670_v46 = vor.u32 %v1381_v40, %v1169_v41  ;;  %v1159_v47 = vld [vmem:[%s2061_s2 + $0x30] sm:$0xf] }
   0xc   :  { %319 = vmatpush.bf16.msra.mxu0 %v1619_v29  ;;  %v1380_v48 = vld [vmem:[%s2061_s2 + $0x34] sm:$0xf0]  ;;  %v1223_v49 = vld [vmem:[%s2061_s2 + $0xb0] sm:$0xf]  ;;  %v1682_v50 = vor.u32 %v1397_v42, %v1233_v43  ;;  %v1379_v52 = vld [vmem:[%s2061_s2 + $0x34] sm:$0xf] }
   0xd   :  { %358 = vmatpush.bf16.msra.mxu1 %v1632_v33  ;;  %397 = vmatpush.bf16.msra.mxu2 %v1634_v34  ;;  %v1396_v51 = vld [vmem:[%s2061_s2 + $0xb4] sm:$0xf0]  ;;  %v1161_v53 = vld [vmem:[%s2061_s2 + $0x38] sm:$0xf0]  ;;  %v1395_v54 = vld [vmem:[%s2061_s2 + $0xb4] sm:$0xf]  ;;  %v1700_v56 = vor.u32 %v1380_v48, %v1159_v47 }
   0xe   :  { %436 = vmatpush.bf16.msra.mxu3 %v1646_v38  ;;  %v1225_v55 = vld [vmem:[%s2061_s2 + $0xb8] sm:$0xf0]  ;;  %v1704_v57 = vor.u32 %v1396_v51, %v1223_v49  ;;  %v1706_v58 = vor.u32 %v1379_v52, %v1161_v53  ;;  %v1151_v59 = vld [vmem:[%s2061_s2 + $0x20] sm:$0xf]  ;;  %v1378_v60 = vld [vmem:[%s2061_s2 + $0x24] sm:$0xf0] }
   0xf   :  { %v1215_v61 = vld [vmem:[%s2061_s2 + $0xa0] sm:$0xf]  ;;  %v1718_v62 = vor.u32 %v1395_v54, %v1225_v55  ;;  %v1394_v63 = vld [vmem:[%s2061_s2 + $0xa4] sm:$0xf0]  ;;  %v1377_v0 = vld [vmem:[%s2061_s2 + $0x24] sm:$0xf]  ;;  %v1736_v5 = vor.u32 %v1378_v60, %v1151_v59 }
  0x10   :  { %320 = vmatpush.bf16.msra.mxu0 %v1664_v44  ;;  %v1153_v1 = vld [vmem:[%s2061_s2 + $0x28] sm:$0xf0]  ;;  %v1393_v2 = vld [vmem:[%s2061_s2 + $0xa4] sm:$0xf]  ;;  %v1740_v6 = vor.u32 %v1394_v63, %v1215_v61  ;;  %v1143_v10 = vld [vmem:[%s2061_s2 + $0x10] sm:$0xf] }
  0x11   :  { %359 = vmatpush.bf16.msra.mxu1 %v1668_v45  ;;  %398 = vmatpush.bf16.msra.mxu2 %v1670_v46  ;;  %v1217_v4 = vld [vmem:[%s2061_s2 + $0xa8] sm:$0xf0]  ;;  %v1742_v9 = vor.u32 %v1377_v0, %v1153_v1  ;;  %v1376_v11 = vld [vmem:[%s2061_s2 + $0x14] sm:$0xf0]  ;;  %v1207_v13 = vld [vmem:[%s2061_s2 + $0x90] sm:$0xf] }
  0x12   :  { %437 = vmatpush.bf16.msra.mxu3 %v1682_v50  ;;  %v1754_v14 = vor.u32 %v1393_v2, %v1217_v4  ;;  %v1392_v15 = vld [vmem:[%s2061_s2 + $0x94] sm:$0xf0]  ;;  %v1375_v18 = vld [vmem:[%s2061_s2 + $0x14] sm:$0xf]  ;;  %v1145_v19 = vld [vmem:[%s2061_s2 + $0x18] sm:$0xf0]  ;;  %v1772_v23 = vor.u32 %v1376_v11, %v1143_v10 }
  0x13   :  { %v1391_v20 = vld [vmem:[%s2061_s2 + $0x94] sm:$0xf]  ;;  %v1209_v22 = vld [vmem:[%s2061_s2 + $0x98] sm:$0xf0]  ;;  %v1135_v24 = vld [vmem:[%s2061_s2] sm:$0xf]  ;;  %v1779_v26 = vor.u32 %v1392_v15, %v1207_v13  ;;  %v1781_v27 = vor.u32 %v1375_v18, %v1145_v19 }
  0x14   :  { %321 = vmatpush.bf16.msra.mxu0 %v1700_v56  ;;  %v1374_v28 = vld [vmem:[%s2061_s2 + $0x4] sm:$0xf0]  ;;  %v1199_v30 = vld [vmem:[%s2061_s2 + $0x80] sm:$0xf] }
  0x15   :  { %360 = vmatpush.bf16.msra.mxu1 %v1704_v57  ;;  %399 = vmatpush.bf16.msra.mxu2 %v1706_v58 }
  0x16   :  { %438 = vmatpush.bf16.msra.mxu3 %v1718_v62 }
  0x18   :  { %322 = vmatpush.bf16.msra.mxu0 %v1736_v5 }
  0x19   :  { %361 = vmatpush.bf16.msra.mxu1 %v1740_v6  ;;  %400 = vmatpush.bf16.msra.mxu2 %v1742_v9 }
  0x1a   :  { %12 = vsyncpa [#allocation5], 0  ;;  %439 = vmatpush.bf16.msra.mxu3 %v1754_v14  ;;  %v1790_v31 = vor.u32 %v1391_v20, %v1209_v22  ;;  %v1390_v32 = vld [vmem:[%s2061_s2 + $0x84] sm:$0xf0]  ;;  %v1373_v35 = vld [vmem:[%s2061_s2 + $0x4] sm:$0xf]  ;;  %v1136_v40 = vor.u32 %v1374_v28, %v1135_v24 }
  0x1b   :  { %v1137_v36 = vld [vmem:[%s2061_s2 + $0x8] sm:$0xf0]  ;;  %v1389_v37 = vld [vmem:[%s2061_s2 + $0x84] sm:$0xf]  ;;  %v1087_v41 = vld [vmem:[%s2059_s0] sm:$0xf]  ;;  %v1200_v43 = vor.u32 %v1390_v32, %v1199_v30 }
  0x1c   :  { %v1201_v39 = vld [vmem:[%s2061_s2 + $0x88] sm:$0xf0]  ;;  %323 = vmatpush.bf16.msra.mxu0 %v1772_v23  ;;  %v1422_v42 = vld [vmem:[%s2059_s0 + $0x4] sm:$0xf0]  ;;  %v1816_v47 = vor.u32 %v1373_v35, %v1137_v36  ;;  %v1421_v48 = vld [vmem:[%s2059_s0 + $0x4] sm:$0xf] }
  0x1d   :  { %362 = vmatpush.bf16.msra.mxu1 %v1779_v26  ;;  %401 = vmatpush.bf16.msra.mxu2 %v1781_v27  ;;  %v1089_v49 = vld [vmem:[%s2059_s0 + $0x8] sm:$0xf0]  ;;  %v1825_v51 = vor.u32 %v1389_v37, %v1201_v39  ;;  %v1088_v52 = vor.u32 %v1422_v42, %v1087_v41  ;;  %v1095_v54 = vld [vmem:[%s2059_s0 + $0x10] sm:$0xf]  ;;  %v1425_v59 = vld [vmem:[%s2059_s0 + $0x24] sm:$0xf] }
  0x1e   :  { %440 = vmatpush.bf16.msra.mxu3 %v1790_v31  ;;  %v1092_v53 = vor.u32 %v1421_v48, %v1089_v49  ;;  %v1419_v55 = vld [vmem:[%s2062_s3 + $0x70] sm:$0xff]  ;;  %v1105_v60 = vld [vmem:[%s2059_s0 + $0x28] sm:$0xf0]  ;;  %v1428_v4 = vld [vmem:[%s2059_s0 + $0x34] sm:$0xf0]  ;;  %s1055_s18 = sshll.u32 %s2063_s4, 4  ;;  %s1056_s18 = int_to_ptr.hbm [resolvable:$true] %s1055_s18 }
  0x1f   :  { %v1108_v63 = vor.u32 %v1425_v59, %v1105_v60  ;;  %v1410_v0 = vld [vmem:[%s2062_s3 + $0x28] sm:$0xff]  ;;  %v1111_v2 = vld [vmem:[%s2059_s0 + $0x30] sm:$0xf]  ;;  %v1409_v13 = vld [vmem:[%s2062_s3 + $0x20] sm:$0xff]  ;;  %s1502_s19 = smov 128   ;;  %s1503_s20 = smov 8  }
  0x20   :  { %324 = vmatpush.bf16.msra.mxu0 %v1136_v40  ;;  %v1418_v1 = vld [vmem:[%s2062_s3 + $0x68] sm:$0xff]  ;;  %v1112_v10 = vor.u32 %v1428_v4, %v1111_v2  ;;  %v1417_v15 = vld [vmem:[%s2062_s3 + $0x60] sm:$0xff]  ;;  %v1408_v18 = vld [vmem:[%s2062_s3 + $0x18] sm:$0xff]  ;;  %s1504_s4 = smov [#allocation4]  }
  0x21   :  { %363 = vmatpush.bf16.msra.mxu1 %v1200_v43  ;;  %402 = vmatpush.bf16.msra.mxu2 %v1816_v47  ;;  %v1416_v19 = vld [vmem:[%s2062_s3 + $0x58] sm:$0xff]  ;;  %v1407_v20 = vld [vmem:[%s2062_s3 + $0x10] sm:$0xff]  ;;  %v1430_v24 = vld [vmem:[%s2059_s0 + $0x44] sm:$0xf0]  ;;  %s1066_s21 = sshll.u32 %s1504_s4, 4  ;;  %s1067_s21 = int_to_ptr.vmem [resolvable:$true] %s1066_s21 }
  0x22   :  { %441 = vmatpush.bf16.msra.mxu3 %v1825_v51  ;;  %v1415_v22 = vld [vmem:[%s2062_s3 + $0x50] sm:$0xff]  ;;  %v1121_v28 = vld [vmem:[%s2059_s0 + $0x48] sm:$0xf0]  ;;  %v1432_v39 = vld [vmem:[%s2059_s0 + $0x54] sm:$0xf0] }
  0x23   :  { %325 = vmatmul.bf16.vlgmr.msra.gmra.mxu0 %v1088_v52  ;;  %v1414_v32 = vld [vmem:[%s2062_s3 + $0x48] sm:$0xff]  ;;  %v1127_v37 = vld [vmem:[%s2059_s0 + $0x50] sm:$0xf]  ;;  %v1129_v41 = vld [vmem:[%s2059_s0 + $0x58] sm:$0xf0] }
  0x24   :  { %364 = vmatmul.bf16.vlgmr.msra.gmra.mxu1 %v1092_v53  ;;  %403 = vmatmul.bf16.vlgmr.msra.gmra.mxu2 %v1088_v52  ;;  %v1406_v36 = vld [vmem:[%s2062_s3 + $0x8] sm:$0xff]  ;;  %v1128_v42 = vor.u32 %v1432_v39, %v1127_v37  ;;  %v1405_v48 = vld [vmem:[%s2062_s3] sm:$0xff] }
  0x25   :  { %767 = vmatpush.bf16.msrb.mxu2 %v1544_v3  ;;  %442 = vmatmul.bf16.vlgmr.msra.gmra.mxu3 %v1092_v53  ;;  %v1424_v3 = vld [vmem:[%s2059_s0 + $0x14] sm:$0xf0]  ;;  %v1413_v49 = vld [vmem:[%s2062_s3 + $0x40] sm:$0xff] }
  0x26   :  { %806 = vmatpush.bf16.msrb.mxu3 %v1555_v7  ;;  %v1423_v7 = vld [vmem:[%s2059_s0 + $0x14] sm:$0xf] }
  0x29   :  { %768 = vmatpush.bf16.msrb.mxu2 %v1582_v16  ;;  %v1097_v16 = vld [vmem:[%s2059_s0 + $0x18] sm:$0xf0] }
  0x2a   :  { %807 = vmatpush.bf16.msrb.mxu3 %v1584_v17  ;;  %v1096_v17 = vor.u32 %v1424_v3, %v1095_v54 }
  0x2d   :  { %769 = vmatpush.bf16.msrb.mxu2 %v1619_v29  ;;  %v1100_v29 = vor.u32 %v1423_v7, %v1097_v16 }
  0x2e   :  { %808 = vmatpush.bf16.msrb.mxu3 %v1632_v33  ;;  %v1412_v33 = vld [vmem:[%s2062_s3 + $0x38] sm:$0xff] }
  0x2f   :  { %605 = vmatpush.bf16.msrb.mxu0 %v1412_v33 }
  0x31   :  { %770 = vmatpush.bf16.msrb.mxu2 %v1664_v44  ;;  %v1420_v44 = vld [vmem:[%s2062_s3 + $0x78] sm:$0xff] }
  0x32   :  { %809 = vmatpush.bf16.msrb.mxu3 %v1668_v45  ;;  %644 = vmatpush.bf16.msrb.mxu1 %v1420_v44  ;;  %v1411_v45 = vld [vmem:[%s2062_s3 + $0x30] sm:$0xff]  ;;  %s1068_s3 = sshll.u32 %s2064_s5, 4  ;;  %s1069_s3 = int_to_ptr.hbm [resolvable:$true] %s1068_s3 }
  0x33   :  { %330 = vmatmul.bf16.gmra.mxu0 %v1096_v17 }
  0x34   :  { %369 = vmatmul.bf16.gmra.mxu1 %v1100_v29  ;;  %408 = vmatmul.bf16.gmra.mxu2 %v1096_v17 }
  0x35   :  { %771 = vmatpush.bf16.msrb.mxu2 %v1700_v56  ;;  %447 = vmatmul.bf16.gmra.mxu3 %v1100_v29  ;;  %v1103_v56 = vld [vmem:[%s2059_s0 + $0x20] sm:$0xf] }
  0x36   :  { %810 = vmatpush.bf16.msrb.mxu3 %v1704_v57  ;;  %606 = vmatpush.bf16.msrb.mxu0 %v1411_v45  ;;  %v1426_v57 = vld [vmem:[%s2059_s0 + $0x24] sm:$0xf0] }
  0x37   :  { %645 = vmatpush.bf16.msrb.mxu1 %v1419_v55  ;;  %v1104_v61 = vor.u32 %v1426_v57, %v1103_v56 }
  0x39   :  { %772 = vmatpush.bf16.msrb.mxu2 %v1736_v5  ;;  %v1427_v5 = vld [vmem:[%s2059_s0 + $0x34] sm:$0xf] }
  0x3a   :  { %811 = vmatpush.bf16.msrb.mxu3 %v1740_v6  ;;  %607 = vmatpush.bf16.msrb.mxu0 %v1410_v0  ;;  %v1113_v6 = vld [vmem:[%s2059_s0 + $0x38] sm:$0xf0] }
  0x3b   :  { %646 = vmatpush.bf16.msrb.mxu1 %v1418_v1  ;;  %v1116_v11 = vor.u32 %v1427_v5, %v1113_v6 }
  0x3d   :  { %773 = vmatpush.bf16.msrb.mxu2 %v1772_v23  ;;  %v1119_v23 = vld [vmem:[%s2059_s0 + $0x40] sm:$0xf] }
  0x3e   :  { %812 = vmatpush.bf16.msrb.mxu3 %v1779_v26  ;;  %608 = vmatpush.bf16.msrb.mxu0 %v1409_v13  ;;  %v1429_v26 = vld [vmem:[%s2059_s0 + $0x44] sm:$0xf]  ;;  %v1120_v30 = vor.u32 %v1430_v24, %v1119_v23 }
  0x3f   :  { %647 = vmatpush.bf16.msrb.mxu1 %v1417_v15  ;;  %v1124_v35 = vor.u32 %v1429_v26, %v1121_v28 }
  0x41   :  { %774 = vmatpush.bf16.msrb.mxu2 %v1136_v40  ;;  %v1431_v40 = vld [vmem:[%s2059_s0 + $0x54] sm:$0xf] }
  0x42   :  { %813 = vmatpush.bf16.msrb.mxu3 %v1200_v43  ;;  %609 = vmatpush.bf16.msrb.mxu0 %v1408_v18  ;;  %v1132_v43 = vor.u32 %v1431_v40, %v1129_v41 }
  0x43   :  { %335 = vmatmul.bf16.gmra.mxu0 %v1104_v61  ;;  %648 = vmatpush.bf16.msrb.mxu1 %v1416_v19 }
  0x44   :  { %374 = vmatmul.bf16.gmra.mxu1 %v1108_v63  ;;  %413 = vmatmul.bf16.gmra.mxu2 %v1104_v61 }
  0x45   :  { %959 = vmatpush.bf16.msra.mxu2 %v1412_v33  ;;  %452 = vmatmul.bf16.gmra.mxu3 %v1108_v63 }
  0x46   :  { %998 = vmatpush.bf16.msra.mxu3 %v1420_v44  ;;  %610 = vmatpush.bf16.msrb.mxu0 %v1407_v20 }
  0x47   :  { %649 = vmatpush.bf16.msrb.mxu1 %v1415_v22 }
  0x49   :  { %960 = vmatpush.bf16.msra.mxu2 %v1411_v45 }
  0x4a   :  { %999 = vmatpush.bf16.msra.mxu3 %v1419_v55  ;;  %611 = vmatpush.bf16.msrb.mxu0 %v1406_v36 }
  0x4b   :  { %650 = vmatpush.bf16.msrb.mxu1 %v1414_v32 }
  0x4d   :  { %961 = vmatpush.bf16.msra.mxu2 %v1410_v0 }
  0x4e   :  { %1000 = vmatpush.bf16.msra.mxu3 %v1418_v1  ;;  %612 = vmatpush.bf16.msrb.mxu0 %v1405_v48 }
  0x4f   :  { %651 = vmatpush.bf16.msrb.mxu1 %v1413_v49 }
  0x51   :  { %962 = vmatpush.bf16.msra.mxu2 %v1409_v13 }
  0x52   :  { %1001 = vmatpush.bf16.msra.mxu3 %v1417_v15  ;;  %845 = vmatpush.bf16.msra.mxu0 %v1557_v8 }
  0x53   :  { %340 = vmatmul.bf16.gmra.mxu0 %v1112_v10  ;;  %884 = vmatpush.bf16.msra.mxu1 %v1569_v12 }
  0x54   :  { %379 = vmatmul.bf16.gmra.mxu1 %v1116_v11  ;;  %418 = vmatmul.bf16.gmra.mxu2 %v1112_v10 }
  0x55   :  { %457 = vmatmul.bf16.gmra.mxu3 %v1116_v11  ;;  %963 = vmatpush.bf16.msra.mxu2 %v1408_v18 }
  0x56   :  { %1002 = vmatpush.bf16.msra.mxu3 %v1416_v19  ;;  %846 = vmatpush.bf16.msra.mxu0 %v1596_v21 }
  0x57   :  { %885 = vmatpush.bf16.msra.mxu1 %v1607_v25 }
  0x59   :  { %964 = vmatpush.bf16.msra.mxu2 %v1407_v20 }
  0x5a   :  { %1003 = vmatpush.bf16.msra.mxu3 %v1415_v22  ;;  %847 = vmatpush.bf16.msra.mxu0 %v1634_v34 }
  0x5b   :  { %886 = vmatpush.bf16.msra.mxu1 %v1646_v38 }
  0x5d   :  { %965 = vmatpush.bf16.msra.mxu2 %v1406_v36 }
  0x5e   :  { %1004 = vmatpush.bf16.msra.mxu3 %v1414_v32  ;;  %848 = vmatpush.bf16.msra.mxu0 %v1670_v46 }
  0x5f   :  { %887 = vmatpush.bf16.msra.mxu1 %v1682_v50 }
  0x61   :  { %966 = vmatpush.bf16.msra.mxu2 %v1405_v48 }
  0x62   :  { %1005 = vmatpush.bf16.msra.mxu3 %v1413_v49  ;;  %849 = vmatpush.bf16.msra.mxu0 %v1706_v58 }
  0x63   :  { %345 = vmatmul.bf16.gmra.mxu0 %v1120_v30  ;;  %888 = vmatpush.bf16.msra.mxu1 %v1718_v62 }
  0x64   :  { %384 = vmatmul.bf16.gmra.mxu1 %v1124_v35  ;;  %423 = vmatmul.bf16.gmra.mxu2 %v1120_v30 }
  0x65   :  { %462 = vmatmul.bf16.gmra.mxu3 %v1124_v35 }
  0x66   :  { %850 = vmatpush.bf16.msra.mxu0 %v1742_v9 }
  0x67   :  { %889 = vmatpush.bf16.msra.mxu1 %v1754_v14 }
  0x6a   :  { %851 = vmatpush.bf16.msra.mxu0 %v1781_v27 }
  0x6b   :  { %890 = vmatpush.bf16.msra.mxu1 %v1790_v31 }
  0x6e   :  { %852 = vmatpush.bf16.msra.mxu0 %v1816_v47 }
  0x6f   :  { %891 = vmatpush.bf16.msra.mxu1 %v1825_v51 }
  0x73   :  { %350 = vmatmul.bf16.gmra.mxu0 %v1128_v42 }
  0x74   :  { %389 = vmatmul.bf16.gmra.mxu1 %v1132_v43  ;;  %428 = vmatmul.bf16.gmra.mxu2 %v1128_v42 }
  0x75   :  { %467 = vmatmul.bf16.gmra.mxu3 %v1132_v43 }
  0xa0   :  { %v326_v8 = vpop.f32.mrf.mxu0 }
  0xa1   :  { %v365_v12 = vpop.f32.mrf.mxu1 }
  0xa2   :  { %v366_v25 = vadd.f32 %v365_v12, %v326_v8  ;;  %v1327_v12 = vld [vmem:[%s2060_s1] sm:$0xf] }
  0xa4   :  { %v473_v58 = vmax.f32 %v366_v25, 0.0  ;;  %v1433_v25 = vld [vmem:[%s2060_s1 + $0x4] sm:$0xf] }
  0xa7   :  { %v404_v21 = vpop.f32.mrf.mxu2 }
  0xa8   :  { %v443_v34 = vpop.f32.mrf.mxu3  ;;  %v328_v38 = vpop.f32.mrf.mxu0 }
  0xa9   :  { %v367_v46 = vpop.f32.mrf.mxu1  ;;  %v444_v9 = vadd.f32 %v443_v34, %v404_v21  ;;  %v1434_v21 = vld [vmem:[%s2060_s1 + $0x4] sm:$0xf0] }
  0xaa   :  { %v368_v50 = vadd.f32 %v367_v46, %v328_v38  ;;  %v1976_v46 = vor.u32 %v1434_v21, %v1327_v12  ;;  %v1353_v21 = vld [vmem:[%s2060_s1 + $0x38] sm:$0xf0] }
  0xab   :  { %v474_v31 = vmax.f32 %v444_v9, 0.0 }
  0xac   :  { %v475_v62 = vmax.f32 %v368_v50, 0.0  ;;  %v1329_v50 = vld [vmem:[%s2060_s1 + $0x8] sm:$0xf0]  ;;  %775 = vmatmul.bf16.vlgmr.msrb.gmra.mxu2 %v1976_v46 }
  0xae   :  { %v497_v52 = vpack.c.bf16 %v475_v62, %v473_v58 }
  0xaf   :  { %v406_v53 = vpop.f32.mrf.mxu2 }
  0xb0   :  { %v445_v14 = vpop.f32.mrf.mxu3  ;;  %613 = vmatmul.bf16.vlgmr.msrb.gmra.mxu0 %v497_v52  ;;  %v331_v54 = vpop.f32.mrf.mxu0  ;;  %v1981_v52 = vor.u32 %v1433_v25, %v1329_v50  ;;  %v1441_v50 = vld [vmem:[%s2060_s1 + $0x44] sm:$0xf] }
  0xb1   :  { %v446_v27 = vadd.f32 %v445_v14, %v406_v53  ;;  %v370_v3 = vpop.f32.mrf.mxu1 }
  0xb2   :  { %v371_v29 = vadd.f32 %v370_v3, %v331_v54  ;;  %814 = vmatmul.bf16.vlgmr.msrb.gmra.mxu3 %v1981_v52 }
  0xb3   :  { %v476_v7 = vmax.f32 %v446_v27, 0.0 }
  0xb4   :  { %v477_v45 = vmax.f32 %v371_v29, 0.0 }
  0xb5   :  { %v498_v16 = vpack.c.bf16 %v476_v7, %v474_v31 }
  0xb7   :  { %652 = vmatmul.bf16.vlgmr.msrb.gmra.mxu1 %v498_v16  ;;  %v409_v17 = vpop.f32.mrf.mxu2 }
  0xb8   :  { %v448_v33 = vpop.f32.mrf.mxu3  ;;  %v333_v47 = vpop.f32.mrf.mxu0 }
  0xb9   :  { %v372_v44 = vpop.f32.mrf.mxu1  ;;  %v449_v57 = vadd.f32 %v448_v33, %v409_v17  ;;  %v1335_v33 = vld [vmem:[%s2060_s1 + $0x10] sm:$0xf] }
  0xba   :  { %v373_v51 = vadd.f32 %v372_v44, %v333_v47  ;;  %v1436_v47 = vld [vmem:[%s2060_s1 + $0x14] sm:$0xf0]  ;;  %v1435_v44 = vld [vmem:[%s2060_s1 + $0x14] sm:$0xf] }
  0xbb   :  { %v478_v1 = vmax.f32 %v449_v57, 0.0 }
  0xbc   :  { %v479_v55 = vmax.f32 %v373_v51, 0.0  ;;  %v1337_v51 = vld [vmem:[%s2060_s1 + $0x18] sm:$0xf0] }
  0xbe   :  { %v499_v56 = vpack.c.bf16 %v479_v55, %v477_v45 }
  0xbf   :  { %v411_v59 = vpop.f32.mrf.mxu2 }
  0xc0   :  { %v450_v60 = vpop.f32.mrf.mxu3  ;;  %618 = vmatmul.bf16.gmra.mxu0 %v499_v56  ;;  %v336_v61 = vpop.f32.mrf.mxu0  ;;  %v1336_v56 = vor.u32 %v1436_v47, %v1335_v33 }
  0xc1   :  { %v451_v63 = vadd.f32 %v450_v60, %v411_v59  ;;  %v375_v0 = vpop.f32.mrf.mxu1  ;;  %v1340_v59 = vor.u32 %v1435_v44, %v1337_v51 }
  0xc2   :  { %v376_v6 = vadd.f32 %v375_v0, %v336_v61  ;;  %780 = vmatmul.bf16.gmra.mxu2 %v1336_v56 }
  0xc3   :  { %v480_v2 = vmax.f32 %v451_v63, 0.0  ;;  %819 = vmatmul.bf16.gmra.mxu3 %v1340_v59 }
  0xc4   :  { %v481_v18 = vmax.f32 %v376_v6, 0.0 }
  0xc5   :  { %v500_v4 = vpack.c.bf16 %v480_v2, %v478_v1 }
  0xc7   :  { %657 = vmatmul.bf16.gmra.mxu1 %v500_v4  ;;  %v414_v5 = vpop.f32.mrf.mxu2 }
  0xc8   :  { %v453_v10 = vpop.f32.mrf.mxu3  ;;  %v338_v11 = vpop.f32.mrf.mxu0 }
  0xc9   :  { %v377_v13 = vpop.f32.mrf.mxu1  ;;  %v454_v22 = vadd.f32 %v453_v10, %v414_v5 }
  0xca   :  { %v378_v15 = vadd.f32 %v377_v13, %v338_v11 }
  0xcb   :  { %v482_v32 = vmax.f32 %v454_v22, 0.0  ;;  %v1438_v22 = vld [vmem:[%s2060_s1 + $0x24] sm:$0xf0] }
  0xcc   :  { %v483_v19 = vmax.f32 %v378_v15, 0.0 }
  0xce   :  { %v501_v20 = vpack.c.bf16 %v483_v19, %v481_v18 }
  0xcf   :  { %v416_v23 = vpop.f32.mrf.mxu2 }
  0xd0   :  { %v455_v24 = vpop.f32.mrf.mxu3  ;;  %623 = vmatmul.bf16.gmra.mxu0 %v501_v20  ;;  %v341_v26 = vpop.f32.mrf.mxu0  ;;  %v1343_v20 = vld [vmem:[%s2060_s1 + $0x20] sm:$0xf] }
  0xd1   :  { %v456_v28 = vadd.f32 %v455_v24, %v416_v23  ;;  %v380_v30 = vpop.f32.mrf.mxu1  ;;  %v1437_v23 = vld [vmem:[%s2060_s1 + $0x24] sm:$0xf]  ;;  %v1345_v24 = vld [vmem:[%s2060_s1 + $0x28] sm:$0xf0] }
  0xd2   :  { %v381_v39 = vadd.f32 %v380_v30, %v341_v26  ;;  %v1344_v30 = vor.u32 %v1438_v22, %v1343_v20 }
  0xd3   :  { %v484_v35 = vmax.f32 %v456_v28, 0.0 }
  0xd4   :  { %v485_v48 = vmax.f32 %v381_v39, 0.0  ;;  %785 = vmatmul.bf16.gmra.mxu2 %v1344_v30 }
  0xd5   :  { %v502_v36 = vpack.c.bf16 %v484_v35, %v482_v32  ;;  %v1348_v35 = vor.u32 %v1437_v23, %v1345_v24 }
  0xd7   :  { %662 = vmatmul.bf16.gmra.mxu1 %v502_v36  ;;  %v419_v37 = vpop.f32.mrf.mxu2  ;;  %824 = vmatmul.bf16.gmra.mxu3 %v1348_v35 }
  0xd8   :  { %v458_v40 = vpop.f32.mrf.mxu3  ;;  %v343_v41 = vpop.f32.mrf.mxu0 }
  0xd9   :  { %v382_v42 = vpop.f32.mrf.mxu1  ;;  %v459_v34 = vadd.f32 %v458_v40, %v419_v37 }
  0xda   :  { %v383_v43 = vadd.f32 %v382_v42, %v343_v41 }
  0xdb   :  { %v486_v14 = vmax.f32 %v459_v34, 0.0  ;;  %v1359_v34 = vld [vmem:[%s2060_s1 + $0x40] sm:$0xf] }
  0xdc   :  { %v487_v49 = vmax.f32 %v383_v43, 0.0 }
  0xde   :  { %v503_v8 = vpack.c.bf16 %v487_v49, %v485_v48  ;;  %v1351_v48 = vld [vmem:[%s2060_s1 + $0x30] sm:$0xf]  ;;  %v1440_v49 = vld [vmem:[%s2060_s1 + $0x34] sm:$0xf0] }
  0xdf   :  { %v421_v38 = vpop.f32.mrf.mxu2  ;;  %v1352_v12 = vor.u32 %v1440_v49, %v1351_v48 }
  0xe0   :  { %v460_v58 = vpop.f32.mrf.mxu3  ;;  %628 = vmatmul.bf16.gmra.mxu0 %v503_v8  ;;  %v346_v62 = vpop.f32.mrf.mxu0  ;;  %v1439_v8 = vld [vmem:[%s2060_s1 + $0x34] sm:$0xf] }
  0xe1   :  { %v461_v9 = vadd.f32 %v460_v58, %v421_v38  ;;  %v385_v53 = vpop.f32.mrf.mxu1  ;;  %v1356_v25 = vor.u32 %v1439_v8, %v1353_v21  ;;  %v1442_v38 = vld [vmem:[%s2060_s1 + $0x44] sm:$0xf0] }
  0xe2   :  { %v386_v31 = vadd.f32 %v385_v53, %v346_v62  ;;  %v1360_v58 = vor.u32 %v1442_v38, %v1359_v34  ;;  %v1444_v53 = vld [vmem:[%s2060_s1 + $0x54] sm:$0xf0] }
  0xe3   :  { %v488_v54 = vmax.f32 %v461_v9, 0.0  ;;  %v1367_v9 = vld [vmem:[%s2060_s1 + $0x50] sm:$0xf] }
  0xe4   :  { %v489_v45 = vmax.f32 %v386_v31, 0.0  ;;  %790 = vmatmul.bf16.gmra.mxu2 %v1352_v12 }
  0xe5   :  { %v504_v27 = vpack.c.bf16 %v488_v54, %v486_v14  ;;  %v1443_v14 = vld [vmem:[%s2060_s1 + $0x54] sm:$0xf]  ;;  %v1368_v54 = vor.u32 %v1444_v53, %v1367_v9 }
  0xe7   :  { %667 = vmatmul.bf16.gmra.mxu1 %v504_v27  ;;  %v424_v3 = vpop.f32.mrf.mxu2  ;;  %829 = vmatmul.bf16.gmra.mxu3 %v1356_v25  ;;  %v1369_v27 = vld [vmem:[%s2060_s1 + $0x58] sm:$0xf0] }
  0xe8   :  { %v463_v7 = vpop.f32.mrf.mxu3  ;;  %v348_v16 = vpop.f32.mrf.mxu0 }
  0xe9   :  { %v387_v17 = vpop.f32.mrf.mxu1  ;;  %v464_v60 = vadd.f32 %v463_v7, %v424_v3  ;;  %v1372_v3 = vor.u32 %v1443_v14, %v1369_v27 }
  0xea   :  { %v388_v29 = vadd.f32 %v387_v17, %v348_v16 }
  0xeb   :  { %v490_v4 = vmax.f32 %v464_v60, 0.0 }
  0xec   :  { %v491_v55 = vmax.f32 %v388_v29, 0.0 }
  0xee   :  { %v505_v57 = vpack.c.bf16 %v491_v55, %v489_v45 }
  0xef   :  { %v426_v61 = vpop.f32.mrf.mxu2 }
  0xf0   :  { %v465_v63 = vpop.f32.mrf.mxu3  ;;  %633 = vmatmul.bf16.gmra.mxu0 %v505_v57  ;;  %v351_v0 = vpop.f32.mrf.mxu0 }
  0xf1   :  { %v466_v1 = vadd.f32 %v465_v63, %v426_v61  ;;  %v390_v2 = vpop.f32.mrf.mxu1 }
  0xf2   :  { %v391_v11 = vadd.f32 %v390_v2, %v351_v0 }
  0xf3   :  { %v492_v5 = vmax.f32 %v466_v1, 0.0 }
  0xf4   :  { %v493_v26 = vmax.f32 %v391_v11, 0.0  ;;  %795 = vmatmul.bf16.gmra.mxu2 %v1360_v58 }
  0xf5   :  { %v506_v6 = vpack.c.bf16 %v492_v5, %v490_v4 }
  0xf7   :  { %672 = vmatmul.bf16.gmra.mxu1 %v506_v6  ;;  %v429_v10 = vpop.f32.mrf.mxu2 }
  0xf8   :  { %v468_v13 = vpop.f32.mrf.mxu3  ;;  %v353_v15 = vpop.f32.mrf.mxu0 }
  0xf9   :  { %v392_v18 = vpop.f32.mrf.mxu1  ;;  %v469_v36 = vadd.f32 %v468_v13, %v429_v10 }
  0xfa   :  { %v393_v19 = vadd.f32 %v392_v18, %v353_v15 }
  0xfb   :  { %v494_v41 = vmax.f32 %v469_v36, 0.0 }
  0xfc   :  { %v495_v28 = vmax.f32 %v393_v19, 0.0 }
  0xfe   :  { %v507_v32 = vpack.c.bf16 %v495_v28, %v493_v26 }
  0xff   :  { %v431_v37 = vpop.f32.mrf.mxu2 }
 0x100   :  { %v470_v39 = vpop.f32.mrf.mxu3  ;;  %638 = vmatmul.bf16.gmra.mxu0 %v507_v32 }
 0x101   :  { %v471_v40 = vadd.f32 %v470_v39, %v431_v37 }
 0x103   :  { %v496_v42 = vmax.f32 %v471_v40, 0.0 }
 0x104   :  { %800 = vmatmul.bf16.gmra.mxu2 %v1368_v54 }
 0x105   :  { %v508_v43 = vpack.c.bf16 %v496_v42, %v494_v41 }
 0x107   :  { %677 = vmatmul.bf16.gmra.mxu1 %v508_v43 }
 0x110   :  { %853 = vmatmul.bf16.vlgmr.msra.gmra.mxu0 %v1976_v46  ;;  %v1361_v46 = vld [vmem:[%s2060_s1 + $0x48] sm:$0xf0]  ;;  %s1501_s1 = smov [#allocation2]  }
 0x111   :  { %v1364_v62 = vor.u32 %v1441_v50, %v1361_v46  ;;  %s1053_s15 = sshll.u32 %s1501_s1, 4  ;;  %s1054_s15 = int_to_ptr.vmem [resolvable:$true] %s1053_s15 }
 0x113   :  { %834 = vmatmul.bf16.gmra.mxu3 %v1364_v62 }
 0x117   :  { %892 = vmatmul.bf16.vlgmr.msra.gmra.mxu1 %v1981_v52 }
 0x120   :  { %858 = vmatmul.bf16.gmra.mxu0 %v1336_v56 }
 0x123   :  { %839 = vmatmul.bf16.gmra.mxu3 %v1372_v3 }
 0x127   :  { %897 = vmatmul.bf16.gmra.mxu1 %v1340_v59 }
 0x12d   :  { %v614_v52 = vpop.f32.mrf.mxu0 }
 0x12f   :  { %v776_v2 = vpop.f32.mrf.mxu2 }
 0x130   :  { %863 = vmatmul.bf16.gmra.mxu0 %v1344_v30 }
 0x134   :  { %v653_v31 = vpop.f32.mrf.mxu1 }
 0x135   :  { %v654_v7 = vadd.f32 %v653_v31, %v614_v52  ;;  %v616_v16 = vpop.f32.mrf.mxu0  ;;  %v815_v6 = vpop.f32.mrf.mxu3 }
 0x136   :  { %v816_v10 = vadd.f32 %v815_v6, %v776_v2 }
 0x137   :  { %683 = vst [vmem:[#allocation2] sm:$0xff] %v654_v7  ;;  %902 = vmatmul.bf16.gmra.mxu1 %v1348_v35  ;;  %v778_v13 = vpop.f32.mrf.mxu2 }
 0x138   :  { %v923_v20 = vmax.f32 %v816_v10, 0.0 }
 0x13c   :  { %v655_v17 = vpop.f32.mrf.mxu1 }
 0x13d   :  { %v656_v29 = vadd.f32 %v655_v17, %v616_v16  ;;  %v619_v33 = vpop.f32.mrf.mxu0  ;;  %v817_v19 = vpop.f32.mrf.mxu3 }
 0x13e   :  { %v818_v22 = vadd.f32 %v817_v19, %v778_v13 }
 0x13f   :  { %684 = vst [vmem:[#allocation2 + $0x8] sm:$0xff] %v656_v29 }
 0x140   :  { %868 = vmatmul.bf16.gmra.mxu0 %v1352_v12  ;;  %v925_v23 = vmax.f32 %v818_v22, 0.0 }
 0x142   :  { %v947_v24 = vpack.c.bf16 %v925_v23, %v923_v20 }
 0x144   :  { %v658_v47 = vpop.f32.mrf.mxu1  ;;  %967 = vmatmul.bf16.vlgmr.msra.gmra.mxu2 %v947_v24 }
 0x145   :  { %v659_v44 = vadd.f32 %v658_v47, %v619_v33  ;;  %v621_v51 = vpop.f32.mrf.mxu0  ;;  %v781_v28 = vpop.f32.mrf.mxu2 }
 0x146   :  { %v820_v35 = vpop.f32.mrf.mxu3 }
 0x147   :  { %685 = vst [vmem:[#allocation2 + $0x10] sm:$0xff] %v659_v44  ;;  %907 = vmatmul.bf16.gmra.mxu1 %v1356_v25  ;;  %v821_v36 = vadd.f32 %v820_v35, %v781_v28 }
 0x149   :  { %v927_v43 = vmax.f32 %v821_v36, 0.0 }
 0x14c   :  { %v660_v45 = vpop.f32.mrf.mxu1 }
 0x14d   :  { %v661_v55 = vadd.f32 %v660_v45, %v621_v51  ;;  %v624_v56 = vpop.f32.mrf.mxu0  ;;  %v783_v39 = vpop.f32.mrf.mxu2 }
 0x14e   :  { %v822_v42 = vpop.f32.mrf.mxu3 }
 0x14f   :  { %686 = vst [vmem:[#allocation2 + $0x18] sm:$0xff] %v661_v55  ;;  %v823_v48 = vadd.f32 %v822_v42, %v783_v39 }
 0x150   :  { %873 = vmatmul.bf16.gmra.mxu0 %v1360_v58 }
 0x151   :  { %v929_v49 = vmax.f32 %v823_v48, 0.0 }
 0x153   :  { %v949_v8 = vpack.c.bf16 %v929_v49, %v927_v43 }
 0x154   :  { %v663_v57 = vpop.f32.mrf.mxu1 }
 0x155   :  { %v664_v59 = vadd.f32 %v663_v57, %v624_v56  ;;  %v626_v60 = vpop.f32.mrf.mxu0  ;;  %972 = vmatmul.bf16.gmra.mxu2 %v949_v8 }
 0x157   :  { %687 = vst [vmem:[#allocation2 + $0x20] sm:$0xff] %v664_v59  ;;  %912 = vmatmul.bf16.gmra.mxu1 %v1364_v62  ;;  %v786_v21 = vpop.f32.mrf.mxu2 }
 0x15a   :  { %v825_v38 = vpop.f32.mrf.mxu3 }
 0x15b   :  { %v826_v50 = vadd.f32 %v825_v38, %v786_v21 }
 0x15c   :  { %v665_v61 = vpop.f32.mrf.mxu1 }
 0x15d   :  { %v666_v63 = vadd.f32 %v665_v61, %v626_v60  ;;  %v629_v0 = vpop.f32.mrf.mxu0  ;;  %v931_v53 = vmax.f32 %v826_v50, 0.0 }
 0x15f   :  { %688 = vst [vmem:[#allocation2 + $0x28] sm:$0xff] %v666_v63  ;;  %v788_v46 = vpop.f32.mrf.mxu2 }
 0x160   :  { %878 = vmatmul.bf16.gmra.mxu0 %v1368_v54 }
 0x162   :  { %v827_v9 = vpop.f32.mrf.mxu3 }
 0x163   :  { %v828_v14 = vadd.f32 %v827_v9, %v788_v46 }
 0x164   :  { %v668_v1 = vpop.f32.mrf.mxu1 }
 0x165   :  { %v669_v4 = vadd.f32 %v668_v1, %v629_v0  ;;  %v631_v5 = vpop.f32.mrf.mxu0  ;;  %v933_v54 = vmax.f32 %v828_v14, 0.0 }
 0x167   :  { %689 = vst [vmem:[#allocation2 + $0x30] sm:$0xff] %v669_v4  ;;  %917 = vmatmul.bf16.gmra.mxu1 %v1372_v3  ;;  %v951_v27 = vpack.c.bf16 %v933_v54, %v931_v53  ;;  %v791_v31 = vpop.f32.mrf.mxu2 }
 0x169   :  { %977 = vmatmul.bf16.gmra.mxu2 %v951_v27 }
 0x16a   :  { %v830_v16 = vpop.f32.mrf.mxu3 }
 0x16b   :  { %v831_v17 = vadd.f32 %v830_v16, %v791_v31 }
 0x16c   :  { %v670_v11 = vpop.f32.mrf.mxu1 }
 0x16d   :  { %v671_v15 = vadd.f32 %v670_v11, %v631_v5  ;;  %v634_v18 = vpop.f32.mrf.mxu0  ;;  %v935_v55 = vmax.f32 %v831_v17, 0.0 }
 0x16f   :  { %690 = vst [vmem:[#allocation2 + $0x38] sm:$0xff] %v671_v15  ;;  %v793_v47 = vpop.f32.mrf.mxu2 }
 0x172   :  { %v832_v45 = vpop.f32.mrf.mxu3 }
 0x173   :  { %v833_v56 = vadd.f32 %v832_v45, %v793_v47 }
 0x174   :  { %v673_v26 = vpop.f32.mrf.mxu1 }
 0x175   :  { %v674_v30 = vadd.f32 %v673_v26, %v634_v18  ;;  %v636_v32 = vpop.f32.mrf.mxu0  ;;  %v937_v60 = vmax.f32 %v833_v56, 0.0 }
 0x177   :  { %691 = vst [vmem:[#allocation2 + $0x40] sm:$0xff] %v674_v30  ;;  %v953_v63 = vpack.c.bf16 %v937_v60, %v935_v55  ;;  %v796_v1 = vpop.f32.mrf.mxu2 }
 0x179   :  { %982 = vmatmul.bf16.gmra.mxu2 %v953_v63 }
 0x17c   :  { %v675_v37 = vpop.f32.mrf.mxu1 }
 0x17d   :  { %v676_v40 = vadd.f32 %v675_v37, %v636_v32  ;;  %v639_v41 = vpop.f32.mrf.mxu0 }
 0x17f   :  { %692 = vst [vmem:[#allocation2 + $0x48] sm:$0xff] %v676_v40  ;;  %v798_v11 = vpop.f32.mrf.mxu2 }
 0x184   :  { %v678_v12 = vpop.f32.mrf.mxu1 }
 0x185   :  { %v679_v25 = vadd.f32 %v678_v12, %v639_v41  ;;  %v641_v34 = vpop.f32.mrf.mxu0 }
 0x187   :  { %693 = vst [vmem:[#allocation2 + $0x50] sm:$0xff] %v679_v25  ;;  %v801_v32 = vpop.f32.mrf.mxu2 }
 0x18c   :  { %v680_v58 = vpop.f32.mrf.mxu1 }
 0x18d   :  { %v681_v62 = vadd.f32 %v680_v58, %v641_v34  ;;  %v854_v52 = vpop.f32.mrf.mxu0 }
 0x18f   :  { %694 = vst [vmem:[#allocation2 + $0x58] sm:$0xff] %v681_v62  ;;  %v803_v41 = vpop.f32.mrf.mxu2 }
 0x190   :  { %1061 = dma.vmem_to_hbm [thread:$0]  %s1054_s15, 1536, %s1056_s18, [#allocation3], %s1502_s19, %s1502_s19, %s1503_s20  }
 0x194   :  { %v893_v3 = vpop.f32.mrf.mxu1 }
 0x195   :  { %v856_v7 = vpop.f32.mrf.mxu0  ;;  %v894_v29 = vadd.f32 %v893_v3, %v854_v52 }
 0x196   :  { %v835_v4 = vpop.f32.mrf.mxu3 }
 0x197   :  { %v924_v57 = vmax.f32 %v894_v29, 0.0  ;;  %v836_v5 = vadd.f32 %v835_v4, %v796_v1 }
 0x199   :  { %v939_v19 = vmax.f32 %v836_v5, 0.0 }
 0x19c   :  { %v895_v33 = vpop.f32.mrf.mxu1 }
 0x19d   :  { %v896_v44 = vadd.f32 %v895_v33, %v856_v7  ;;  %v859_v51 = vpop.f32.mrf.mxu0 }
 0x19e   :  { %v837_v18 = vpop.f32.mrf.mxu3 }
 0x19f   :  { %v926_v59 = vmax.f32 %v896_v44, 0.0  ;;  %v838_v20 = vadd.f32 %v837_v18, %v798_v11 }
 0x1a1   :  { %v948_v61 = vpack.c.bf16 %v926_v59, %v924_v57  ;;  %v941_v24 = vmax.f32 %v838_v20, 0.0 }
 0x1a3   :  { %1006 = vmatmul.bf16.vlgmr.msra.gmra.mxu3 %v948_v61  ;;  %v955_v28 = vpack.c.bf16 %v941_v24, %v939_v19 }
 0x1a4   :  { %v898_v0 = vpop.f32.mrf.mxu1 }
 0x1a5   :  { %v861_v2 = vpop.f32.mrf.mxu0  ;;  %v899_v6 = vadd.f32 %v898_v0, %v859_v51  ;;  %987 = vmatmul.bf16.gmra.mxu2 %v955_v28 }
 0x1a6   :  { %v840_v36 = vpop.f32.mrf.mxu3 }
 0x1a7   :  { %v928_v22 = vmax.f32 %v899_v6, 0.0  ;;  %v841_v37 = vadd.f32 %v840_v36, %v801_v32 }
 0x1a9   :  { %v943_v49 = vmax.f32 %v841_v37, 0.0 }
 0x1ac   :  { %v900_v10 = vpop.f32.mrf.mxu1 }
 0x1ad   :  { %v901_v13 = vadd.f32 %v900_v10, %v861_v2  ;;  %v864_v15 = vpop.f32.mrf.mxu0 }
 0x1ae   :  { %v842_v48 = vpop.f32.mrf.mxu3 }
 0x1af   :  { %v930_v23 = vmax.f32 %v901_v13, 0.0  ;;  %v843_v8 = vadd.f32 %v842_v48, %v803_v41 }
 0x1b1   :  { %v950_v26 = vpack.c.bf16 %v930_v23, %v928_v22  ;;  %v945_v25 = vmax.f32 %v843_v8, 0.0 }
 0x1b3   :  { %1011 = vmatmul.bf16.gmra.mxu3 %v950_v26  ;;  %v957_v38 = vpack.c.bf16 %v945_v25, %v943_v49 }
 0x1b4   :  { %v903_v30 = vpop.f32.mrf.mxu1 }
 0x1b5   :  { %v866_v35 = vpop.f32.mrf.mxu0  ;;  %v904_v39 = vadd.f32 %v903_v30, %v864_v15  ;;  %992 = vmatmul.bf16.gmra.mxu2 %v957_v38 }
 0x1b7   :  { %v932_v12 = vmax.f32 %v904_v39, 0.0 }
 0x1bc   :  { %v905_v40 = vpop.f32.mrf.mxu1 }
 0x1bd   :  { %v906_v42 = vadd.f32 %v905_v40, %v866_v35  ;;  %v869_v43 = vpop.f32.mrf.mxu0 }
 0x1bf   :  { %v934_v21 = vmax.f32 %v906_v42, 0.0 }
 0x1c1   :  { %v952_v34 = vpack.c.bf16 %v934_v21, %v932_v12 }
 0x1c3   :  { %1016 = vmatmul.bf16.gmra.mxu3 %v952_v34 }
 0x1c4   :  { %v908_v50 = vpop.f32.mrf.mxu1 }
 0x1c5   :  { %v871_v58 = vpop.f32.mrf.mxu0  ;;  %v909_v46 = vadd.f32 %v908_v50, %v869_v43 }
 0x1c7   :  { %v936_v53 = vmax.f32 %v909_v46, 0.0  ;;  %v968_v61 = vpop.f32.mrf.mxu2 }
 0x1cc   :  { %v910_v62 = vpop.f32.mrf.mxu1 }
 0x1cd   :  { %v911_v52 = vadd.f32 %v910_v62, %v871_v58  ;;  %v874_v9 = vpop.f32.mrf.mxu0 }
 0x1cf   :  { %v938_v14 = vmax.f32 %v911_v52, 0.0  ;;  %v970_v63 = vpop.f32.mrf.mxu2 }
 0x1d1   :  { %v954_v54 = vpack.c.bf16 %v938_v14, %v936_v53 }
 0x1d3   :  { %1021 = vmatmul.bf16.gmra.mxu3 %v954_v54 }
 0x1d4   :  { %v913_v27 = vpop.f32.mrf.mxu1 }
 0x1d5   :  { %v876_v3 = vpop.f32.mrf.mxu0  ;;  %v914_v31 = vadd.f32 %v913_v27, %v874_v9 }
 0x1d7   :  { %v940_v17 = vmax.f32 %v914_v31, 0.0 }
 0x1d8   :  { %v973_v0 = vpop.f32.mrf.mxu2 }
 0x1dc   :  { %v915_v7 = vpop.f32.mrf.mxu1 }
 0x1dd   :  { %v916_v16 = vadd.f32 %v915_v7, %v876_v3  ;;  %v879_v47 = vpop.f32.mrf.mxu0 }
 0x1df   :  { %v942_v29 = vmax.f32 %v916_v16, 0.0 }
 0x1e0   :  { %v975_v4 = vpop.f32.mrf.mxu2 }
 0x1e1   :  { %v956_v33 = vpack.c.bf16 %v942_v29, %v940_v17 }
 0x1e3   :  { %1026 = vmatmul.bf16.gmra.mxu3 %v956_v33 }
 0x1e4   :  { %v918_v44 = vpop.f32.mrf.mxu1 }
 0x1e5   :  { %v919_v51 = vadd.f32 %v918_v44, %v879_v47  ;;  %v881_v45 = vpop.f32.mrf.mxu0 }
 0x1e7   :  { %v944_v57 = vmax.f32 %v919_v51, 0.0 }
 0x1ec   :  { %v920_v55 = vpop.f32.mrf.mxu1  ;;  %v978_v13 = vpop.f32.mrf.mxu2 }
 0x1ed   :  { %v921_v56 = vadd.f32 %v920_v55, %v881_v45 }
 0x1ef   :  { %v946_v59 = vmax.f32 %v921_v56, 0.0 }
 0x1f1   :  { %v958_v60 = vpack.c.bf16 %v946_v59, %v944_v57 }
 0x1f3   :  { %1031 = vmatmul.bf16.gmra.mxu3 %v958_v60 }
 0x1f4   :  { %v980_v19 = vpop.f32.mrf.mxu2 }
 0x1fc   :  { %v983_v23 = vpop.f32.mrf.mxu2 }
 0x204   :  { %v985_v28 = vpop.f32.mrf.mxu2 }
 0x226   :  { %v1007_v1 = vpop.f32.mrf.mxu3 }
 0x227   :  { %v1008_v2 = vadd.f32 %v1007_v1, %v968_v61 }
 0x228   :  { %v988_v37 = vpop.f32.mrf.mxu2 }
 0x229   :  { %1037 = vst [vmem:[#allocation4] sm:$0xff] %v1008_v2 }
 0x22e   :  { %v1009_v5 = vpop.f32.mrf.mxu3 }
 0x22f   :  { %v1010_v6 = vadd.f32 %v1009_v5, %v970_v63 }
 0x230   :  { %v990_v41 = vpop.f32.mrf.mxu2 }
 0x231   :  { %1038 = vst [vmem:[#allocation4 + $0x8] sm:$0xff] %v1010_v6 }
 0x236   :  { %v1012_v10 = vpop.f32.mrf.mxu3 }
 0x237   :  { %v1013_v11 = vadd.f32 %v1012_v10, %v973_v0 }
 0x238   :  { %v993_v48 = vpop.f32.mrf.mxu2 }
 0x239   :  { %1039 = vst [vmem:[#allocation4 + $0x10] sm:$0xff] %v1013_v11 }
 0x23e   :  { %v1014_v15 = vpop.f32.mrf.mxu3 }
 0x23f   :  { %v1015_v18 = vadd.f32 %v1014_v15, %v975_v4 }
 0x240   :  { %v995_v12 = vpop.f32.mrf.mxu2 }
 0x241   :  { %1040 = vst [vmem:[#allocation4 + $0x18] sm:$0xff] %v1015_v18 }
 0x246   :  { %v1017_v20 = vpop.f32.mrf.mxu3 }
 0x247   :  { %v1018_v22 = vadd.f32 %v1017_v20, %v978_v13 }
 0x249   :  { %1041 = vst [vmem:[#allocation4 + $0x20] sm:$0xff] %v1018_v22 }
 0x24e   :  { %v1019_v24 = vpop.f32.mrf.mxu3 }
 0x24f   :  { %v1020_v26 = vadd.f32 %v1019_v24, %v980_v19 }
 0x251   :  { %1042 = vst [vmem:[#allocation4 + $0x28] sm:$0xff] %v1020_v26 }
 0x256   :  { %v1022_v30 = vpop.f32.mrf.mxu3 }
 0x257   :  { %v1023_v32 = vadd.f32 %v1022_v30, %v983_v23 }
 0x259   :  { %1043 = vst [vmem:[#allocation4 + $0x30] sm:$0xff] %v1023_v32 }
 0x25e   :  { %v1024_v35 = vpop.f32.mrf.mxu3 }
 0x25f   :  { %v1025_v36 = vadd.f32 %v1024_v35, %v985_v28 }
 0x261   :  { %1044 = vst [vmem:[#allocation4 + $0x38] sm:$0xff] %v1025_v36 }
 0x266   :  { %v1027_v39 = vpop.f32.mrf.mxu3 }
 0x267   :  { %v1028_v40 = vadd.f32 %v1027_v39, %v988_v37 }
 0x269   :  { %1045 = vst [vmem:[#allocation4 + $0x40] sm:$0xff] %v1028_v40 }
 0x26e   :  { %v1029_v42 = vpop.f32.mrf.mxu3 }
 0x26f   :  { %v1030_v43 = vadd.f32 %v1029_v42, %v990_v41 }
 0x271   :  { %1046 = vst [vmem:[#allocation4 + $0x48] sm:$0xff] %v1030_v43 }
 0x276   :  { %v1032_v49 = vpop.f32.mrf.mxu3 }
 0x277   :  { %v1033_v8 = vadd.f32 %v1032_v49, %v993_v48 }
 0x279   :  { %1047 = vst [vmem:[#allocation4 + $0x50] sm:$0xff] %v1033_v8 }
 0x27e   :  { %v1034_v21 = vpop.f32.mrf.mxu3 }
 0x27f   :  { %v1035_v25 = vadd.f32 %v1034_v21, %v995_v12 }
 0x281   :  { %1048 = vst [vmem:[#allocation4 + $0x58] sm:$0xff] %v1035_v25 }
 0x282   :  { %1074 = dma.vmem_to_hbm [thread:$0]  %s1067_s21, 1536, %s1069_s3, [#allocation5], %s1502_s19, %s1502_s19, %s1503_s20  }
 0x283   :  { %1497 = dma.done.wait [#allocation3], 1536  }
 0x284   :  { %1498 = vsyncadd [#allocation3], 4294965760 }
 0x285   :  { %1499 = dma.done.wait [#allocation5], 1536  }
 0x286   :  { %1500 = vsyncadd [#allocation5], 4294965760 }
 0x287   :  { %1083 = vsyncpa [#allocation3], 1 }
 0x288   :  { %1084 = vsyncpa [#allocation5], 1 }

</bundles_post_ra>
